<compile_context>
chip_gen: v7x
topology: tpu7x:2x2x1
jax: 0.10.0
libtpu: 0.0.40
codegen_flags: <defaults>
</compile_context>

<pallas_src>
import functools

import jax
import jax.numpy as jnp
from jax import lax
from jax.experimental import pallas as pl
from jax.experimental.pallas import tpu as pltpu


def _pick_q_tile(seq_len: int) -> int:
    for cand in (256, 128, 64, 32, 16, 8):
        if cand <= seq_len and seq_len % cand == 0:
            return cand
    return seq_len


def _split_and_fold_qkv(w_qkv, b_qkv, num_heads, head_dim):
    """Reorder interleaved per-head [Q_h|K_h|V_h] columns into [Q_all | K_all | V_all],
    fold 1/sqrt(head_dim) into the Q block, cast matmul weights to bf16."""
    D = w_qkv.shape[0]
    scale = 1.0 / (float(head_dim) ** 0.5)
    w = w_qkv.reshape(D, num_heads, 3, head_dim)
    b = b_qkv.reshape(num_heads, 3, head_dim)
    w_q = (w[:, :, 0, :] * scale).reshape(D, D).astype(jnp.bfloat16)
    b_q = (b[:, 0, :] * scale).reshape(1, D).astype(jnp.float32)
    w_kv = jnp.concatenate(
        [w[:, :, 1, :].reshape(D, D), w[:, :, 2, :].reshape(D, D)], axis=1
    ).astype(jnp.bfloat16)
    b_kv = jnp.concatenate(
        [b[:, 1, :].reshape(1, D), b[:, 2, :].reshape(1, D)], axis=1
    ).astype(jnp.float32)
    return w_q, b_q, w_kv, b_kv


def _mhsa_kernel(x_ref, wq_ref, bq_ref, wkv_ref, bkv_ref, wout_ref, bout_ref,
                 o_ref, kv_cache,
                 *, num_heads: int, head_dim: int, q_tile: int):
    # x_ref: (S, D) full sequence of this batch element (batch dim squeezed).
    # o_ref: (q_tile, D) output tile for (batch, query-tile) = (pid0, pid1).
    # kv_cache: (S, 2D) bf16 scratch, [K_all | V_all], persists across query tiles.
    qi = pl.program_id(1)
    D = num_heads * head_dim

    # ---- K/V projection for the whole sequence, once per batch element --------
    @pl.when(qi == 0)
    def _():
        xf = x_ref[...].astype(jnp.bfloat16)                               # (S, D)
        kv = jnp.dot(xf, wkv_ref[...], preferred_element_type=jnp.float32)
        kv = kv + bkv_ref[...]                                             # (S, 2D)
        kv_cache[...] = kv.astype(jnp.bfloat16)

    # ---- Q projection for this query tile (scale pre-folded into wq/bq) -------
    row0 = pl.multiple_of(qi * q_tile, q_tile)
    xq = x_ref[pl.ds(row0, q_tile), :].astype(jnp.bfloat16)                # (tq, D)
    q = jnp.dot(xq, wq_ref[...], preferred_element_type=jnp.float32) + bq_ref[...]
    q = q.astype(jnp.bfloat16)                                             # (tq, D)

    # ---- Per-head attention, fused into the output projection -----------------
    acc = jnp.zeros((q_tile, D), jnp.float32)
    for h in range(num_heads):                     # static unrolled, contiguous slices
        lo = h * head_dim
        hi = lo + head_dim
        q_h = q[:, lo:hi]                                                  # (tq, hd) bf16
        k_h = kv_cache[:, lo:hi]                                           # (S, hd)  bf16
        v_h = kv_cache[:, D + lo:D + hi]                                   # (S, hd)  bf16

        # scores = q_h @ k_h^T, contraction on the last dim of both (no transpose)
        s = lax.dot_general(q_h, k_h, (((1,), (1,)), ((), ())),
                            preferred_element_type=jnp.float32)            # (tq, S)
        m = jnp.max(s, axis=-1, keepdims=True)
        p = jnp.exp(s - m)                                                 # f32
        denom = jnp.sum(p, axis=-1, keepdims=True)                         # (tq, 1)

        ctx = jnp.dot(p.astype(jnp.bfloat16), v_h,
                      preferred_element_type=jnp.float32)                  # (tq, hd)
        ctx = ctx * pl.reciprocal(denom, approx=True)        # deferred softmax norm
        acc = acc + jnp.dot(ctx.astype(jnp.bfloat16), wout_ref[lo:hi, :],
                            preferred_element_type=jnp.float32)            # (tq, D)

    o_ref[...] = (acc + bout_ref[...]).astype(o_ref.dtype)


def multi_head_self_attention(embeddings, w_qkv, b_qkv, w_out, b_out, num_heads):
    """embeddings: (B, S, D); w_qkv: (D, 3D); b_qkv: (3D,); w_out: (D, D); b_out: (D,).
    Weights are the (in_features, out_features)-transposed PyTorch Linear weights."""
    B, S, D = embeddings.shape
    assert D % num_heads == 0
    head_dim = D // num_heads
    q_tile = _pick_q_tile(S)
    nq = S // q_tile

    # Host-side (once-per-model in practice): reorder / fold scale / bf16-cast weights.
    w_q, b_q, w_kv, b_kv = _split_and_fold_qkv(w_qkv, b_qkv, num_heads, head_dim)
    w_out_bf = w_out.astype(jnp.bfloat16)
    b_out2 = b_out.reshape(1, D).astype(jnp.float32)

    kernel = functools.partial(_mhsa_kernel, num_heads=num_heads,
                               head_dim=head_dim, q_tile=q_tile)

    flops = 2 * B * (S * D * 3 * D + 2 * num_heads * S * S * head_dim + S * D * D)
    bytes_accessed = (embeddings.size * 4
                      + (w_q.size + w_kv.size + w_out_bf.size) * 2
                      + (b_q.size + b_kv.size + b_out2.size) * 4
                      + B * S * D * 4)
    cost = pl.CostEstimate(flops=flops,
                           transcendentals=B * num_heads * S * S,
                           bytes_accessed=bytes_accessed)

    return pl.pallas_call(
        kernel,
        out_shape=jax.ShapeDtypeStruct((B, S, D), embeddings.dtype),
        grid_spec=pltpu.PrefetchScalarGridSpec(
            num_scalar_prefetch=0,
            grid=(B, nq),
            in_specs=[
                pl.BlockSpec((None, S, D), lambda b, qi: (b, 0, 0)),   # x (full sequence)
                pl.BlockSpec((D, D), lambda b, qi: (0, 0)),            # W_q (scaled, bf16)
                pl.BlockSpec((1, D), lambda b, qi: (0, 0)),            # b_q (scaled)
                pl.BlockSpec((D, 2 * D), lambda b, qi: (0, 0)),        # W_kv (bf16)
                pl.BlockSpec((1, 2 * D), lambda b, qi: (0, 0)),        # b_kv
                pl.BlockSpec((D, D), lambda b, qi: (0, 0)),            # W_out (bf16)
                pl.BlockSpec((1, D), lambda b, qi: (0, 0)),            # b_out
            ],
            out_specs=pl.BlockSpec((None, q_tile, D), lambda b, qi: (b, qi, 0)),
            scratch_shapes=[pltpu.VMEM((S, 2 * D), jnp.bfloat16)],     # K/V cache
        ),
        compiler_params=pltpu.CompilerParams(
            dimension_semantics=("parallel", "arbitrary"),
            vmem_limit_bytes=64 * 1024 * 1024,
        ),
        cost_estimate=cost,
    )(embeddings, w_q, b_q, w_kv, b_kv, w_out_bf, b_out2)


def _reference(embeddings, w_qkv, b_qkv, w_out, b_out, num_heads):
    """Pure-JAX f32 reference mirroring the PyTorch forward (mask=None)."""
    B, S, D = embeddings.shape
    hd = D // num_heads
    qkv = embeddings @ w_qkv + b_qkv                             # (B, S, 3D)
    qkv = qkv.reshape(B, S, num_heads, 3 * hd).transpose(0, 2, 1, 3)
    q, k, v = qkv[..., :hd], qkv[..., hd:2 * hd], qkv[..., 2 * hd:]
    scaled = jnp.einsum('bhqd,bhkd->bhqk', q, k) / (hd ** 0.5)
    attn = jax.nn.softmax(scaled, axis=-1)
    ctx = jnp.einsum('bhqk,bhkd->bhqd', attn, v)
    ctx = ctx.transpose(0, 2, 1, 3).reshape(B, S, D)
    return ctx @ w_out + b_out


if __name__ == "__main__":
    B, S, MODEL_DIM, NUM_HEADS = 2, 8, 32, 4

    key = jax.random.PRNGKey(0)
    kx, k1, k2, k3, k4 = jax.random.split(key, 5)

    # Deterministic parameter init (PyTorch nn.Linear-style uniform bounds).
    bound = 1.0 / (MODEL_DIM ** 0.5)
    x = jax.random.normal(kx, (B, S, MODEL_DIM), dtype=jnp.float32)
    w_qkv = jax.random.uniform(k1, (MODEL_DIM, 3 * MODEL_DIM), jnp.float32, -bound, bound)
    b_qkv = jax.random.uniform(k2, (3 * MODEL_DIM,), jnp.float32, -bound, bound)
    w_out = jax.random.uniform(k3, (MODEL_DIM, MODEL_DIM), jnp.float32, -bound, bound)
    b_out = jax.random.uniform(k4, (MODEL_DIM,), jnp.float32, -bound, bound)

    out = multi_head_self_attention(x, w_qkv, b_qkv, w_out, b_out, NUM_HEADS)
    out = jax.block_until_ready(out)

    ref = _reference(x, w_qkv, b_qkv, w_out, b_out, NUM_HEADS)
    assert out.shape == (B, S, MODEL_DIM)
    # bf16 MXU operands with f32 accumulation: validate at a bf16-appropriate tolerance.
    assert jnp.allclose(out, ref, rtol=2e-2, atol=2e-2), "mismatch vs reference"

    # TODO(synk): optional additive `mask` argument not plumbed through (module default mask=None).
    print("KERNEL_OK")
</pallas_src>

<mosaic_0001>
module attributes {stable_mosaic.version = 11 : i64} {
  func.func @_mhsa_kernel(%arg0: i32, %arg1: i32, %arg2: memref<1x8x32xf32, #tpu.memory_space<vmem>>, %arg3: memref<32x32xbf16, #tpu.memory_space<vmem>>, %arg4: memref<1x32xf32, #tpu.memory_space<vmem>>, %arg5: memref<32x64xbf16, #tpu.memory_space<vmem>>, %arg6: memref<1x64xf32, #tpu.memory_space<vmem>>, %arg7: memref<32x32xbf16, #tpu.memory_space<vmem>>, %arg8: memref<1x32xf32, #tpu.memory_space<vmem>>, %arg9: memref<1x8x32xf32, #tpu.memory_space<vmem>>, %arg10: memref<8x64xbf16, #tpu.memory_space<vmem>>) attributes {dimension_semantics = [#tpu.dimension_semantics<parallel>, #tpu.dimension_semantics<arbitrary>], iteration_bounds = array<i64: 2, 1>, scalar_prefetch = 0 : i64, scratch_operands = 1 : i64, tpu.core_type = #tpu.core_type<tc>, window_params = [{transform_indices = @transform_0, window_bounds = array<i64: 1, 8, 32>}, {pipeline_mode = #tpu.pipeline_mode<synchronous>, transform_indices = @transform_1, window_bounds = array<i64: 32, 32>}, {pipeline_mode = #tpu.pipeline_mode<synchronous>, transform_indices = @transform_2, window_bounds = array<i64: 1, 32>}, {pipeline_mode = #tpu.pipeline_mode<synchronous>, transform_indices = @transform_3, window_bounds = array<i64: 32, 64>}, {pipeline_mode = #tpu.pipeline_mode<synchronous>, transform_indices = @transform_4, window_bounds = array<i64: 1, 64>}, {pipeline_mode = #tpu.pipeline_mode<synchronous>, transform_indices = @transform_5, window_bounds = array<i64: 32, 32>}, {pipeline_mode = #tpu.pipeline_mode<synchronous>, transform_indices = @transform_6, window_bounds = array<i64: 1, 32>}, {transform_indices = @transform_7, window_bounds = array<i64: 1, 8, 32>}]} {
    %c0_i32 = arith.constant 0 : i32
    %0 = arith.cmpi eq, %arg1, %c0_i32 : i32
    %1 = arith.extui %0 : i1 to i32
    %c0_i32_0 = arith.constant 0 : i32
    %2 = arith.cmpi ne, %1, %c0_i32_0 : i32
    scf.if %2 {
      %c0_49 = arith.constant 0 : index
      %c0_50 = arith.constant 0 : index
      %c0_51 = arith.constant 0 : index
      %102 = vector.load %arg2[%c0_49, %c0_50, %c0_51] : memref<1x8x32xf32, #tpu.memory_space<vmem>>, vector<1x8x32xf32>
      %103 = vector.shape_cast %102 : vector<1x8x32xf32> to vector<8x32xf32>
      %104 = arith.truncf %103 : vector<8x32xf32> to vector<8x32xbf16>
      %c0_52 = arith.constant 0 : index
      %c0_53 = arith.constant 0 : index
      %105 = vector.load %arg5[%c0_52, %c0_53] : memref<32x64xbf16, #tpu.memory_space<vmem>>, vector<32x64xbf16>
      %cst_54 = arith.constant dense<0.000000e+00> : vector<8x64xf32>
      %106 = tpu.matmul %104, %105, %cst_54 {dimension_numbers = #tpu.dot_dimension_numbers<[1], [0], [0], [1], [0, 0, 1, 1], [], []>} : vector<8x32xbf16>, vector<32x64xbf16>, vector<8x64xf32> -> vector<8x64xf32>
      %c0_55 = arith.constant 0 : index
      %c0_56 = arith.constant 0 : index
      %107 = vector.load %arg6[%c0_55, %c0_56] : memref<1x64xf32, #tpu.memory_space<vmem>>, vector<1x64xf32>
      %108 = vector.broadcast %107 : vector<1x64xf32> to vector<8x64xf32>
      %109 = arith.addf %106, %108 : vector<8x64xf32>
      %110 = arith.truncf %109 : vector<8x64xf32> to vector<8x64xbf16>
      %c0_57 = arith.constant 0 : index
      %c0_58 = arith.constant 0 : index
      %111 = vector.load %arg10[%c0_57, %c0_58] : memref<8x64xbf16, #tpu.memory_space<vmem>>, vector<8x64xbf16>
      tpu.vector_store %arg10[%c0_57, %c0_58], %110 {strides = array<i32>} : memref<8x64xbf16, #tpu.memory_space<vmem>>, vector<8x64xbf16>,
    } else {
    }
    %c8_i32 = arith.constant 8 : i32
    %3 = arith.muli %arg1, %c8_i32 : i32
    %4 = tpu.assume_multiple %3, 8 : i32
    %c0 = arith.constant 0 : index
    %5 = arith.index_cast %4 : i32 to index
    %c0_1 = arith.constant 0 : index
    %6 = vector.load %arg2[%c0, %5, %c0_1] : memref<1x8x32xf32, #tpu.memory_space<vmem>>, vector<1x8x32xf32>
    %7 = vector.shape_cast %6 : vector<1x8x32xf32> to vector<8x32xf32>
    %8 = arith.truncf %7 : vector<8x32xf32> to vector<8x32xbf16>
    %c0_2 = arith.constant 0 : index
    %c0_3 = arith.constant 0 : index
    %9 = vector.load %arg3[%c0_2, %c0_3] : memref<32x32xbf16, #tpu.memory_space<vmem>>, vector<32x32xbf16>
    %cst = arith.constant dense<0.000000e+00> : vector<8x32xf32>
    %10 = tpu.matmul %8, %9, %cst {dimension_numbers = #tpu.dot_dimension_numbers<[1], [0], [0], [1], [0, 0, 1, 1], [], []>} : vector<8x32xbf16>, vector<32x32xbf16>, vector<8x32xf32> -> vector<8x32xf32>
    %c0_4 = arith.constant 0 : index
    %c0_5 = arith.constant 0 : index
    %11 = vector.load %arg4[%c0_4, %c0_5] : memref<1x32xf32, #tpu.memory_space<vmem>>, vector<1x32xf32>
    %12 = vector.broadcast %11 : vector<1x32xf32> to vector<8x32xf32>
    %13 = arith.addf %10, %12 : vector<8x32xf32>
    %14 = arith.truncf %13 : vector<8x32xf32> to vector<8x32xbf16>
    %cst_6 = arith.constant 0.000000e+00 : f32
    %15 = vector.broadcast %cst_6 : f32 to vector<8x32xf32>
    %16 = vector.extract_strided_slice %14 {offsets = [0, 0], sizes = [8, 8], strides = [1, 1]} : vector<8x32xbf16> to vector<8x8xbf16>
    %c0_7 = arith.constant 0 : index
    %c0_8 = arith.constant 0 : index
    %17 = vector.load %arg10[%c0_7, %c0_8] : memref<8x64xbf16, #tpu.memory_space<vmem>>, vector<8x8xbf16>
    %c0_9 = arith.constant 0 : index
    %c32 = arith.constant 32 : index
    %18 = vector.load %arg10[%c0_9, %c32] : memref<8x64xbf16, #tpu.memory_space<vmem>>, vector<8x8xbf16>
    %cst_10 = arith.constant dense<0.000000e+00> : vector<8x8xf32>
    %19 = tpu.matmul %16, %17, %cst_10 {dimension_numbers = #tpu.dot_dimension_numbers<[1], [1], [0], [0], [0, 0, 1, 0], [], []>} : vector<8x8xbf16>, vector<8x8xbf16>, vector<8x8xf32> -> vector<8x8xf32>
    %cst_11 = arith.constant dense<0xFF800000> : vector<8xf32>
    %20 = vector.multi_reduction <maximumf>, %19, %cst_11 [1] : vector<8x8xf32> to vector<8xf32>
    %21 = vector.shape_cast %20 : vector<8xf32> to vector<8x1xf32>
    %22 = vector.broadcast %21 : vector<8x1xf32> to vector<8x8xf32>
    %23 = arith.subf %19, %22 : vector<8x8xf32>
    %24 = math.exp %23 : vector<8x8xf32>
    %cst_12 = arith.constant dense<0.000000e+00> : vector<8xf32>
    %25 = vector.multi_reduction <add>, %24, %cst_12 [1] : vector<8x8xf32> to vector<8xf32>
    %26 = vector.shape_cast %25 : vector<8xf32> to vector<8x1xf32>
    %27 = arith.truncf %24 : vector<8x8xf32> to vector<8x8xbf16>
    %cst_13 = arith.constant dense<0.000000e+00> : vector<8x8xf32>
    %28 = tpu.matmul %27, %18, %cst_13 {dimension_numbers = #tpu.dot_dimension_numbers<[1], [0], [0], [1], [0, 0, 1, 1], [], []>} : vector<8x8xbf16>, vector<8x8xbf16>, vector<8x8xf32> -> vector<8x8xf32>
    %29 = tpu.reciprocal %26 {approx = true} : vector<8x1xf32> -> vector<8x1xf32>
    %30 = vector.broadcast %29 : vector<8x1xf32> to vector<8x8xf32>
    %31 = arith.mulf %28, %30 : vector<8x8xf32>
    %32 = arith.truncf %31 : vector<8x8xf32> to vector<8x8xbf16>
    %c0_14 = arith.constant 0 : index
    %c0_15 = arith.constant 0 : index
    %33 = vector.load %arg7[%c0_14, %c0_15] : memref<32x32xbf16, #tpu.memory_space<vmem>>, vector<8x32xbf16>
    %cst_16 = arith.constant dense<0.000000e+00> : vector<8x32xf32>
    %34 = tpu.matmul %32, %33, %cst_16 {dimension_numbers = #tpu.dot_dimension_numbers<[1], [0], [0], [1], [0, 0, 1, 1], [], []>} : vector<8x8xbf16>, vector<8x32xbf16>, vector<8x32xf32> -> vector<8x32xf32>
    %35 = arith.addf %15, %34 : vector<8x32xf32>
    %36 = vector.extract_strided_slice %14 {offsets = [0, 8], sizes = [8, 8], strides = [1, 1]} : vector<8x32xbf16> to vector<8x8xbf16>
    %c0_17 = arith.constant 0 : index
    %c8 = arith.constant 8 : index
    %37 = vector.load %arg10[%c0_17, %c8] : memref<8x64xbf16, #tpu.memory_space<vmem>>, vector<8x8xbf16>
    %c0_18 = arith.constant 0 : index
    %c40 = arith.constant 40 : index
    %38 = vector.load %arg10[%c0_18, %c40] : memref<8x64xbf16, #tpu.memory_space<vmem>>, vector<8x8xbf16>
    %cst_19 = arith.constant dense<0.000000e+00> : vector<8x8xf32>
    %39 = tpu.matmul %36, %37, %cst_19 {dimension_numbers = #tpu.dot_dimension_numbers<[1], [1], [0], [0], [0, 0, 1, 0], [], []>} : vector<8x8xbf16>, vector<8x8xbf16>, vector<8x8xf32> -> vector<8x8xf32>
    %cst_20 = arith.constant dense<0xFF800000> : vector<8xf32>
    %40 = vector.multi_reduction <maximumf>, %39, %cst_20 [1] : vector<8x8xf32> to vector<8xf32>
    %41 = vector.shape_cast %40 : vector<8xf32> to vector<8x1xf32>
    %42 = vector.broadcast %41 : vector<8x1xf32> to vector<8x8xf32>
    %43 = arith.subf %39, %42 : vector<8x8xf32>
    %44 = math.exp %43 : vector<8x8xf32>
    %cst_21 = arith.constant dense<0.000000e+00> : vector<8xf32>
    %45 = vector.multi_reduction <add>, %44, %cst_21 [1] : vector<8x8xf32> to vector<8xf32>
    %46 = vector.shape_cast %45 : vector<8xf32> to vector<8x1xf32>
    %47 = arith.truncf %44 : vector<8x8xf32> to vector<8x8xbf16>
    %cst_22 = arith.constant dense<0.000000e+00> : vector<8x8xf32>
    %48 = tpu.matmul %47, %38, %cst_22 {dimension_numbers = #tpu.dot_dimension_numbers<[1], [0], [0], [1], [0, 0, 1, 1], [], []>} : vector<8x8xbf16>, vector<8x8xbf16>, vector<8x8xf32> -> vector<8x8xf32>
    %49 = tpu.reciprocal %46 {approx = true} : vector<8x1xf32> -> vector<8x1xf32>
    %50 = vector.broadcast %49 : vector<8x1xf32> to vector<8x8xf32>
    %51 = arith.mulf %48, %50 : vector<8x8xf32>
    %52 = arith.truncf %51 : vector<8x8xf32> to vector<8x8xbf16>
    %c8_23 = arith.constant 8 : index
    %c0_24 = arith.constant 0 : index
    %53 = vector.load %arg7[%c8_23, %c0_24] : memref<32x32xbf16, #tpu.memory_space<vmem>>, vector<8x32xbf16>
    %cst_25 = arith.constant dense<0.000000e+00> : vector<8x32xf32>
    %54 = tpu.matmul %52, %53, %cst_25 {dimension_numbers = #tpu.dot_dimension_numbers<[1], [0], [0], [1], [0, 0, 1, 1], [], []>} : vector<8x8xbf16>, vector<8x32xbf16>, vector<8x32xf32> -> vector<8x32xf32>
    %55 = arith.addf %35, %54 : vector<8x32xf32>
    %56 = vector.extract_strided_slice %14 {offsets = [0, 16], sizes = [8, 8], strides = [1, 1]} : vector<8x32xbf16> to vector<8x8xbf16>
    %c0_26 = arith.constant 0 : index
    %c16 = arith.constant 16 : index
    %57 = vector.load %arg10[%c0_26, %c16] : memref<8x64xbf16, #tpu.memory_space<vmem>>, vector<8x8xbf16>
    %c0_27 = arith.constant 0 : index
    %c48 = arith.constant 48 : index
    %58 = vector.load %arg10[%c0_27, %c48] : memref<8x64xbf16, #tpu.memory_space<vmem>>, vector<8x8xbf16>
    %cst_28 = arith.constant dense<0.000000e+00> : vector<8x8xf32>
    %59 = tpu.matmul %56, %57, %cst_28 {dimension_numbers = #tpu.dot_dimension_numbers<[1], [1], [0], [0], [0, 0, 1, 0], [], []>} : vector<8x8xbf16>, vector<8x8xbf16>, vector<8x8xf32> -> vector<8x8xf32>
    %cst_29 = arith.constant dense<0xFF800000> : vector<8xf32>
    %60 = vector.multi_reduction <maximumf>, %59, %cst_29 [1] : vector<8x8xf32> to vector<8xf32>
    %61 = vector.shape_cast %60 : vector<8xf32> to vector<8x1xf32>
    %62 = vector.broadcast %61 : vector<8x1xf32> to vector<8x8xf32>
    %63 = arith.subf %59, %62 : vector<8x8xf32>
    %64 = math.exp %63 : vector<8x8xf32>
    %cst_30 = arith.constant dense<0.000000e+00> : vector<8xf32>
    %65 = vector.multi_reduction <add>, %64, %cst_30 [1] : vector<8x8xf32> to vector<8xf32>
    %66 = vector.shape_cast %65 : vector<8xf32> to vector<8x1xf32>
    %67 = arith.truncf %64 : vector<8x8xf32> to vector<8x8xbf16>
    %cst_31 = arith.constant dense<0.000000e+00> : vector<8x8xf32>
    %68 = tpu.matmul %67, %58, %cst_31 {dimension_numbers = #tpu.dot_dimension_numbers<[1], [0], [0], [1], [0, 0, 1, 1], [], []>} : vector<8x8xbf16>, vector<8x8xbf16>, vector<8x8xf32> -> vector<8x8xf32>
    %69 = tpu.reciprocal %66 {approx = true} : vector<8x1xf32> -> vector<8x1xf32>
    %70 = vector.broadcast %69 : vector<8x1xf32> to vector<8x8xf32>
    %71 = arith.mulf %68, %70 : vector<8x8xf32>
    %72 = arith.truncf %71 : vector<8x8xf32> to vector<8x8xbf16>
    %c16_32 = arith.constant 16 : index
    %c0_33 = arith.constant 0 : index
    %73 = vector.load %arg7[%c16_32, %c0_33] : memref<32x32xbf16, #tpu.memory_space<vmem>>, vector<8x32xbf16>
    %cst_34 = arith.constant dense<0.000000e+00> : vector<8x32xf32>
    %74 = tpu.matmul %72, %73, %cst_34 {dimension_numbers = #tpu.dot_dimension_numbers<[1], [0], [0], [1], [0, 0, 1, 1], [], []>} : vector<8x8xbf16>, vector<8x32xbf16>, vector<8x32xf32> -> vector<8x32xf32>
    %75 = arith.addf %55, %74 : vector<8x32xf32>
    %76 = vector.extract_strided_slice %14 {offsets = [0, 24], sizes = [8, 8], strides = [1, 1]} : vector<8x32xbf16> to vector<8x8xbf16>
    %c0_35 = arith.constant 0 : index
    %c24 = arith.constant 24 : index
    %77 = vector.load %arg10[%c0_35, %c24] : memref<8x64xbf16, #tpu.memory_space<vmem>>, vector<8x8xbf16>
    %c0_36 = arith.constant 0 : index
    %c56 = arith.constant 56 : index
    %78 = vector.load %arg10[%c0_36, %c56] : memref<8x64xbf16, #tpu.memory_space<vmem>>, vector<8x8xbf16>
    %cst_37 = arith.constant dense<0.000000e+00> : vector<8x8xf32>
    %79 = tpu.matmul %76, %77, %cst_37 {dimension_numbers = #tpu.dot_dimension_numbers<[1], [1], [0], [0], [0, 0, 1, 0], [], []>} : vector<8x8xbf16>, vector<8x8xbf16>, vector<8x8xf32> -> vector<8x8xf32>
    %cst_38 = arith.constant dense<0xFF800000> : vector<8xf32>
    %80 = vector.multi_reduction <maximumf>, %79, %cst_38 [1] : vector<8x8xf32> to vector<8xf32>
    %81 = vector.shape_cast %80 : vector<8xf32> to vector<8x1xf32>
    %82 = vector.broadcast %81 : vector<8x1xf32> to vector<8x8xf32>
    %83 = arith.subf %79, %82 : vector<8x8xf32>
    %84 = math.exp %83 : vector<8x8xf32>
    %cst_39 = arith.constant dense<0.000000e+00> : vector<8xf32>
    %85 = vector.multi_reduction <add>, %84, %cst_39 [1] : vector<8x8xf32> to vector<8xf32>
    %86 = vector.shape_cast %85 : vector<8xf32> to vector<8x1xf32>
    %87 = arith.truncf %84 : vector<8x8xf32> to vector<8x8xbf16>
    %cst_40 = arith.constant dense<0.000000e+00> : vector<8x8xf32>
    %88 = tpu.matmul %87, %78, %cst_40 {dimension_numbers = #tpu.dot_dimension_numbers<[1], [0], [0], [1], [0, 0, 1, 1], [], []>} : vector<8x8xbf16>, vector<8x8xbf16>, vector<8x8xf32> -> vector<8x8xf32>
    %89 = tpu.reciprocal %86 {approx = true} : vector<8x1xf32> -> vector<8x1xf32>
    %90 = vector.broadcast %89 : vector<8x1xf32> to vector<8x8xf32>
    %91 = arith.mulf %88, %90 : vector<8x8xf32>
    %92 = arith.truncf %91 : vector<8x8xf32> to vector<8x8xbf16>
    %c24_41 = arith.constant 24 : index
    %c0_42 = arith.constant 0 : index
    %93 = vector.load %arg7[%c24_41, %c0_42] : memref<32x32xbf16, #tpu.memory_space<vmem>>, vector<8x32xbf16>
    %cst_43 = arith.constant dense<0.000000e+00> : vector<8x32xf32>
    %94 = tpu.matmul %92, %93, %cst_43 {dimension_numbers = #tpu.dot_dimension_numbers<[1], [0], [0], [1], [0, 0, 1, 1], [], []>} : vector<8x8xbf16>, vector<8x32xbf16>, vector<8x32xf32> -> vector<8x32xf32>
    %95 = arith.addf %75, %94 : vector<8x32xf32>
    %c0_44 = arith.constant 0 : index
    %c0_45 = arith.constant 0 : index
    %96 = vector.load %arg8[%c0_44, %c0_45] : memref<1x32xf32, #tpu.memory_space<vmem>>, vector<1x32xf32>
    %97 = vector.broadcast %96 : vector<1x32xf32> to vector<8x32xf32>
    %98 = arith.addf %95, %97 : vector<8x32xf32>
    %c0_46 = arith.constant 0 : index
    %c0_47 = arith.constant 0 : index
    %c0_48 = arith.constant 0 : index
    %99 = vector.load %arg9[%c0_46, %c0_47, %c0_48] : memref<1x8x32xf32, #tpu.memory_space<vmem>>, vector<1x8x32xf32>
    %100 = vector.shape_cast %99 : vector<1x8x32xf32> to vector<8x32xf32>
    %101 = vector.shape_cast %98 : vector<8x32xf32> to vector<1x8x32xf32>
    tpu.vector_store %arg9[%c0_46, %c0_47, %c0_48], %101 {strides = array<i32>} : memref<1x8x32xf32, #tpu.memory_space<vmem>>, vector<1x8x32xf32>,
    return
  }
  func.func @transform_0(%arg0: i32, %arg1: i32) -> (i32, i32, i32) {
    %c0_i32 = arith.constant 0 : i32
    %c0_i32_0 = arith.constant 0 : i32
    %c0_i32_1 = arith.constant 0 : i32
    return %arg0, %c0_i32, %c0_i32_0 : i32, i32, i32
  }
  func.func @transform_1(%arg0: i32, %arg1: i32) -> (i32, i32) {
    %c0_i32 = arith.constant 0 : i32
    %c0_i32_0 = arith.constant 0 : i32
    %c0_i32_1 = arith.constant 0 : i32
    return %c0_i32, %c0_i32_0 : i32, i32
  }
  func.func @transform_2(%arg0: i32, %arg1: i32) -> (i32, i32) {
    %c0_i32 = arith.constant 0 : i32
    %c0_i32_0 = arith.constant 0 : i32
    %c0_i32_1 = arith.constant 0 : i32
    return %c0_i32, %c0_i32_0 : i32, i32
  }
  func.func @transform_3(%arg0: i32, %arg1: i32) -> (i32, i32) {
    %c0_i32 = arith.constant 0 : i32
    %c0_i32_0 = arith.constant 0 : i32
    %c0_i32_1 = arith.constant 0 : i32
    return %c0_i32, %c0_i32_0 : i32, i32
  }
  func.func @transform_4(%arg0: i32, %arg1: i32) -> (i32, i32) {
    %c0_i32 = arith.constant 0 : i32
    %c0_i32_0 = arith.constant 0 : i32
    %c0_i32_1 = arith.constant 0 : i32
    return %c0_i32, %c0_i32_0 : i32, i32
  }
  func.func @transform_5(%arg0: i32, %arg1: i32) -> (i32, i32) {
    %c0_i32 = arith.constant 0 : i32
    %c0_i32_0 = arith.constant 0 : i32
    %c0_i32_1 = arith.constant 0 : i32
    return %c0_i32, %c0_i32_0 : i32, i32
  }
  func.func @transform_6(%arg0: i32, %arg1: i32) -> (i32, i32) {
    %c0_i32 = arith.constant 0 : i32
    %c0_i32_0 = arith.constant 0 : i32
    %c0_i32_1 = arith.constant 0 : i32
    return %c0_i32, %c0_i32_0 : i32, i32
  }
  func.func @transform_7(%arg0: i32, %arg1: i32) -> (i32, i32, i32) {
    %c0_i32 = arith.constant 0 : i32
    %c0_i32_0 = arith.constant 0 : i32
    return %arg0, %arg1, %c0_i32 : i32, i32, i32
  }
}

</mosaic_0001>

<bundles_post_ra>
// kernel: tpu_custom_call.1
= control target key start
LH: loop header
LB: loop body
LE: loop exit
PB: predicated region body
PF: predicated region fallthrough
CT: control target
= control target key end

     0   :  { %s2451_s0 = inlined_call_operand.hbm [shape: f32[2,8,32], index: 0, kind: input, shape index: {}]   ;;  %s2452_s1 = inlined_call_operand.hbm [shape: bf16[32,32], index: 1, kind: input, shape index: {}]   ;;  %s2453_s2 = inlined_call_operand.hbm [shape: f32[1,32], index: 2, kind: input, shape index: {}]   ;;  %s2454_s3 = inlined_call_operand.hbm [shape: bf16[32,64], index: 3, kind: input, shape index: {}]   ;;  %s2455_s4 = inlined_call_operand.hbm [shape: f32[1,64], index: 4, kind: input, shape index: {}]   ;;  %s2456_s5 = inlined_call_operand.hbm [shape: bf16[32,32], index: 5, kind: input, shape index: {}]   ;;  %s2457_s6 = inlined_call_operand.hbm [shape: f32[1,32], index: 6, kind: input, shape index: {}]   ;;  %s2458_s7 = inlined_call_operand.hbm [shape: f32[2,8,32], index: 7, kind: output, shape index: {}]  }
   0x1   :  { %2465 = sst [smem:[#allocation21_spill]] %s2452_s1 }
   0x2   :  { %2466 = sst [smem:[#allocation22_spill]] %s2458_s7 }
   0x3   :  { %12 = vsyncpa [#allocation4], 0 }
   0x4   :  { %14 = vsyncpa [#allocation4 + $0x1], 0 }
   0x5   :  { %15 = vsyncpa [#allocation7], 0 }
   0x6   :  { %16 = vsyncpa [#allocation10], 0 }
   0x7   :  { %17 = vsyncpa [#allocation13], 0 }
   0x8   :  { %18 = vsyncpa [#allocation5], 0 }
   0x9   :  { %20 = vsyncpa [#allocation5 + $0x1], 0  ;;  %s2010_s24 = smov 0   ;;  %s2012_s25 = smov 0  }
   0xa   :  { %s2014_s26 = smov 0   ;;  %s2016_s27 = smov 0  }
   0xb   :  { %s2018_s28 = smov 0   ;;  %s2020_s29 = smov 0  }
   0xc LB: > { %s2459_s30 = sadd.s32 4294967295, %s1949_s29   ;;  %p1339_p0 = scmp.ge.s32.totalorder %s1949_s29, 1  ;;  %s1949_s29 = sphi %s2020_s29, %s26_s29   ;;  %s1945_s28 = sphi %s2018_s28, %s2489_s28   ;;  %s1941_s27 = sphi %s2016_s27, %s2488_s27   ;;  %s1937_s26 = sphi %s2014_s26, %s2487_s26   ;;  %s1933_s25 = sphi %s2012_s25, %s2486_s25   ;;  %s1929_s24 = sphi %s2010_s24, %s2485_s24  }
   0xd   : > { %p2044_p1 = scmp.eq.s32.totalorder %s2459_s30, 0  ;;  %p223_p2 = scmp.lt.s32.totalorder %s1949_s29, 3 }
   0xe   : > { %s1951_s10 = smov [#allocation6]   ;;  %s1952_s13 = smov [#allocation9]  }
   0xf   : > { %s2467_s8 = scalar_select %p2044_p1, 1, 0 }
  0x10   : > { %p2049_p3 = pnand %p1339_p0, %p223_p2  ;;  %s235_s11 = sshll.u32 %s1951_s10, 4  ;;  %s2053_s11 = int_to_ptr.vmem [resolvable:$true] %s235_s11 }
  0x11   : > { %s259_s14 = sshll.u32 %s1952_s13, 4  ;;  %s1953_s15 = smov [#allocation12]   ;;  %s2064_s14 = int_to_ptr.vmem [resolvable:$true] %s259_s14 }
  0x12   : > { %s2468_s9 = scalar_select %p2049_p3, 1, 0 }
  0x13   : > { %p1530_p4 = pneg %p2049_p3  ;;  %s2066_s16 = sshll.u32 %s1953_s15, 4  ;;  %s284_s16 = int_to_ptr.vmem [resolvable:$true] %s2066_s16 }
  0x14   : > { %s2470_s1 = sld [smem:[#allocation21_spill]] }
  0x15   : > { %p2060_p6 = pnand %p1530_p4, %p2044_p1 }
  0x17   : > { %p2076_p8 = pneg %p2060_p6 }
  0x1a   : > { %s1657_s19 = scalar_lea.hbm %s2470_s1, 256 }
  0x1b   : > { %p1658_p7 = scmp.ne.s32.totalorder %s2470_s1, %s1657_s19  ;;  %p1664_p11 = scmp.lt.u32.totalorder %s1657_s19, %s2470_s1 }
  0x1d   : > { %p1660_p9 = pnand %p2076_p8, %p1658_p7 }
  0x1f   : > { %p1661_p10 = pneg %p1660_p9 }
  0x21   : > { %p1666_p12 = pnand %p1664_p11, %p1661_p10 }
  0x23   : > { %1669 = shalt.err (!%p1666_p12)
}
  0x24   : > { %s1670_s13 = scalar_lea.vmem %s2053_s11, 256  ;;  %p1678_p4 = scmp.lt.s32.totalorder %s2053_s11, %s2053_s11 }
  0x25   : > { %p1671_p13 = scmp.ne.s32.totalorder %s2053_s11, %s1670_s13  ;;  %p1679_p5 = scmp.lt.s32.totalorder %s1670_s13, %s1670_s13 }
  0x27   : > { %p1673_p0 = pnand %p1671_p13, %p2076_p8  ;;  %p1680_p7 = por %p1679_p5, %p1678_p4 }
  0x29   : > { %p1674_p2 = pneg %p1673_p0 }
  0x2b   : > { %p1681_p9 = pnand %p1680_p7, %p1674_p2 }
  0x2d   : > { %1684 = shalt.err (!%p1681_p9)
}
  0x2e   : > { %s1954_s15 = smov 64   ;;  %s1955_s17 = smov 4  }
  0x2f   : > { %1533 = dma.hbm_to_vmem [thread:$0]  (!%p2060_p6), %s2470_s1, 256, %s2053_s11, [#allocation7], %s1954_s15, %s1954_s15, %s1955_s17  }
  0x30   : > { %s1685_s23 = scalar_lea.hbm %s2454_s3, 256 }
  0x31   : > { %p1686_p5 = scmp.ne.s32.totalorder %s2454_s3, %s1685_s23  ;;  %p1692_p12 = scmp.lt.u32.totalorder %s1685_s23, %s2454_s3 }
  0x33   : > { %p1688_p10 = pnand %p1686_p5, %p2076_p8 }
  0x35   : > { %p1689_p11 = pneg %p1688_p10 }
  0x37   : > { %p1694_p13 = pnand %p1692_p12, %p1689_p11 }
  0x39   : > { %1697 = shalt.err (!%p1694_p13)
}
  0x3a   : > { %s1698_s11 = scalar_lea.vmem %s2064_s14, 256  ;;  %p1706_p7 = scmp.lt.s32.totalorder %s2064_s14, %s2064_s14 }
  0x3b   : > { %p1699_p0 = scmp.ne.s32.totalorder %s2064_s14, %s1698_s11  ;;  %p1707_p9 = scmp.lt.s32.totalorder %s1698_s11, %s1698_s11 }
  0x3d   : > { %p1701_p2 = pnand %p1699_p0, %p2076_p8  ;;  %p1708_p5 = por %p1707_p9, %p1706_p7 }
  0x3f   : > { %p1702_p4 = pneg %p1701_p2 }
  0x41   : > { %p1709_p10 = pnand %p1708_p5, %p1702_p4 }
  0x43   : > { %1712 = shalt.err (!%p1709_p10)
}
  0x44   : > { %1539 = dma.hbm_to_vmem [thread:$0]  (!%p2060_p6), %s2454_s3, 256, %s2064_s14, [#allocation10], %s1954_s15, %s1954_s15, %s1955_s17  }
  0x45   : > { %s1713_s20 = scalar_lea.hbm %s2456_s5, 256 }
  0x46   : > { %p1714_p11 = scmp.ne.s32.totalorder %s2456_s5, %s1713_s20  ;;  %p1720_p0 = scmp.lt.u32.totalorder %s1713_s20, %s2456_s5 }
  0x48   : > { %p1716_p12 = pnand %p1714_p11, %p2076_p8 }
  0x4a   : > { %p1717_p13 = pneg %p1716_p12 }
  0x4c   : > { %p1722_p2 = pnand %p1720_p0, %p1717_p13 }
  0x4e   : > { %1725 = shalt.err (!%p1722_p2)
}
  0x4f   : > { %s1726_s11 = scalar_lea.vmem %s284_s16, 256  ;;  %p1734_p5 = scmp.lt.s32.totalorder %s284_s16, %s284_s16 }
  0x50   : > { %p1727_p4 = scmp.ne.s32.totalorder %s284_s16, %s1726_s11  ;;  %p1735_p10 = scmp.lt.s32.totalorder %s1726_s11, %s1726_s11 }
  0x52   : > { %p1729_p7 = pnand %p1727_p4, %p2076_p8  ;;  %p1736_p3 = por %p1735_p10, %p1734_p5 }
  0x54   : > { %p1730_p9 = pneg %p1729_p7 }
  0x56   : > { %p1737_p1 = pnand %p1736_p3, %p1730_p9 }
  0x58   : > { %1740 = shalt.err (!%p1737_p1)
}
  0x59   : > { %1545 = dma.hbm_to_vmem [thread:$0]  (!%p2060_p6), %s2456_s5, 256, %s284_s16, [#allocation13], %s1954_s15, %s1954_s15, %s1955_s17  }
  0x5a   : > { %s1956_s30 = smov [#allocation8]   ;;  %s1957_s19 = smov [#allocation11]  }
  0x5b   : > { %s249_s18 = sshll.u32 %s1956_s30, 4  ;;  %s273_s20 = sshll.u32 %s1957_s19, 4  ;;  %s250_s18 = int_to_ptr.vmem [resolvable:$true] %s249_s18  ;;  %s274_s20 = int_to_ptr.vmem [resolvable:$true] %s273_s20 }
  0x5c   : > { %s1741_s10 = scalar_lea.hbm %s2453_s2, 16 }
  0x5d   : > { %p1742_p1 = scmp.ne.s32.totalorder %s2453_s2, %s1741_s10  ;;  %p1748_p12 = scmp.lt.u32.totalorder %s1741_s10, %s2453_s2 }
  0x5f   : > { %p1744_p3 = pnand %p1742_p1, %p2076_p8 }
  0x61   : > { %p1745_p11 = pneg %p1744_p3 }
  0x63   : > { %p1750_p13 = pnand %p1748_p12, %p1745_p11 }
  0x65   : > { %1753 = shalt.err (!%p1750_p13)
}
  0x66   : > { %s1754_s16 = scalar_lea.vmem %s250_s18, 16  ;;  %s1761_s15 = scalar_lea.vmem %s250_s18, 32 }
  0x67   : > { %p1755_p0 = scmp.ne.s32.totalorder %s250_s18, %s1754_s16  ;;  %p1762_p7 = scmp.lt.s32.totalorder %s250_s18, %s250_s18 }
  0x68   : > { %p1763_p9 = scmp.lt.s32.totalorder %s1761_s15, %s1754_s16 }
  0x69   : > { %p1757_p2 = pnand %p1755_p0, %p2076_p8 }
  0x6a   : > { %p1764_p5 = por %p1763_p9, %p1762_p7 }
  0x6b   : > { %p1758_p4 = pneg %p1757_p2 }
  0x6d   : > { %p1765_p10 = pnand %p1764_p5, %p1758_p4 }
  0x6f   : > { %1768 = shalt.err (!%p1765_p10)
}
  0x70   : > { %1536 = dma.hbm_to_vmem [thread:$0]  (!%p2060_p6), %s2453_s2, 16, %s250_s18, [#allocation7]  }
  0x71   : > { %s1769_s19 = scalar_lea.hbm %s2455_s4, 16 }
  0x72   : > { %p1770_p1 = scmp.ne.s32.totalorder %s2455_s4, %s1769_s19  ;;  %p1776_p12 = scmp.lt.u32.totalorder %s1769_s19, %s2455_s4 }
  0x74   : > { %p1772_p3 = pnand %p1770_p1, %p2076_p8 }
  0x76   : > { %p1773_p11 = pneg %p1772_p3 }
  0x78   : > { %p1778_p13 = pnand %p1776_p12, %p1773_p11 }
  0x7a   : > { %1781 = shalt.err (!%p1778_p13)
}
  0x7b   : > { %s1782_s11 = scalar_lea.vmem %s274_s20, 16  ;;  %s1789_s18 = scalar_lea.vmem %s274_s20, 32 }
  0x7c   : > { %p1783_p0 = scmp.ne.s32.totalorder %s274_s20, %s1782_s11  ;;  %p1790_p7 = scmp.lt.s32.totalorder %s274_s20, %s274_s20 }
  0x7d   : > { %p1791_p9 = scmp.lt.s32.totalorder %s1789_s18, %s1782_s11 }
  0x7e   : > { %p1785_p2 = pnand %p1783_p0, %p2076_p8 }
  0x7f   : > { %p1792_p5 = por %p1791_p9, %p1790_p7 }
  0x80   : > { %p1786_p4 = pneg %p1785_p2 }
  0x82   : > { %p1793_p10 = pnand %p1792_p5, %p1786_p4 }
  0x84   : > { %1796 = shalt.err (!%p1793_p10)
}
  0x85   : > { %1542 = dma.hbm_to_vmem [thread:$0]  (!%p2060_p6), %s2455_s4, 16, %s274_s20, [#allocation10]  }
  0x86   : > { %s1958_s15 = smov [#allocation14]   ;;  %s1797_s30 = scalar_lea.hbm %s2457_s6, 16 }
  0x87   : > { %s297_s17 = sshll.u32 %s1958_s15, 4  ;;  %p1798_p1 = scmp.ne.s32.totalorder %s2457_s6, %s1797_s30  ;;  %s298_s17 = int_to_ptr.vmem [resolvable:$true] %s297_s17 }
  0x88   : > { %p1804_p12 = scmp.lt.u32.totalorder %s1797_s30, %s2457_s6 }
  0x89   : > { %p1800_p3 = pnand %p1798_p1, %p2076_p8 }
  0x8b   : > { %p1801_p11 = pneg %p1800_p3 }
  0x8d   : > { %p1806_p13 = pnand %p1804_p12, %p1801_p11 }
  0x8f   : > { %1809 = shalt.err (!%p1806_p13)
}
  0x90   : > { %s1810_s20 = scalar_lea.vmem %s298_s17, 16  ;;  %s1817_s13 = scalar_lea.vmem %s298_s17, 32 }
  0x91   : > { %p1811_p0 = scmp.ne.s32.totalorder %s298_s17, %s1810_s20  ;;  %p1818_p7 = scmp.lt.s32.totalorder %s298_s17, %s298_s17 }
  0x92   : > { %p1819_p9 = scmp.lt.s32.totalorder %s1817_s13, %s1810_s20 }
  0x93   : > { %p1813_p2 = pnand %p1811_p0, %p2076_p8 }
  0x94   : > { %p1820_p5 = por %p1819_p9, %p1818_p7 }
  0x95   : > { %p1814_p4 = pneg %p1813_p2 }
  0x97   : > { %p1821_p10 = pnand %p1820_p5, %p1814_p4 }
  0x99   : > { %1824 = shalt.err (!%p1821_p10)
}
  0x9a   : > { %1548 = dma.hbm_to_vmem [thread:$0]  (!%p2060_p6), %s2457_s6, 16, %s298_s17, [#allocation13]  }
  0x9b   : > { %s1338_s22 = sadd.s32 4294967294, %s1949_s29   ;;  %s38_s14 = sadd.s32 1, %s1945_s28 }
  0x9c   : > { %p40_p8 = scmp.ge.s32.totalorder %s38_s14, 2  ;;  %s45_s12 = sadd.s32 1, %s1937_s26 }
  0x9d   : > { %p52_p1 = scmp.ne.s32.totalorder %s1937_s26, %s1933_s25  ;;  %p53_p3 = scmp.eq.s32.totalorder %s1949_s29, 0 }
  0x9e   : > { %s2491_s14 = smov (%p40_p8, %s38_s14), 0  ;;  %p58_p12 = scmp.ne.s32.totalorder %s1933_s25, %s1929_s24 }
  0x9f   : > { %p2210_p11 = por %p53_p3, %p52_p1  ;;  %s42_s15 = ssub.s32 %s1945_s28, %s2491_s14 }
  0xa0   : > { %s2473_s17 = sadd.s32 4294967295, %s1949_s29   ;;  %p43_p13 = scmp.eq.s32.totalorder %s42_s15, 0 }
  0xa1   : > { %p210_p6 = scmp.eq.s32.totalorder %s2473_s17, 1  ;;  %p2474_p0 = scmp.ne.s32.totalorder %s2467_s8, 0 }
  0xa2   : > { %p216_p7 = scmp.eq.s32.totalorder %s1338_s22, 1  ;;  %p1563_p5 = scmp.lt.s32.totalorder %s1949_s29, 2 }
  0xa3   : > { %p2222_p2 = por %p2474_p0, %p58_p12  ;;  %p2226_p4 = por %p210_p6, %p52_p1 }
  0xa4   : > { %s2231_s30 = scalar_select %p43_p13, %s1937_s26, %s45_s12  }
  0xa5   : > { %s2476_s1 = scalar_select %p2226_p4, 1, 0 }
  0xa6   : > { %p2233_p9 = por %p216_p7, %p58_p12  ;;  %s308_s21 = sand.u32 1, %s1937_s26  }
  0xa7   : > { %s1348_s23 = sshll.u32 %s1945_s28, 7  ;;  %s1347_s10 = sshll.u32 %s308_s21, 3 }
  0xa8   : > { %s2477_s19 = scalar_select %p2233_p9, 1, 0 }
  0xa9   : > { %s2243_s11 = scalar_lea.hbm %s2451_s0, %s1348_s23  ;;  %s312_s18 = scalar_lea.vmem [#allocation3], %s1347_s10 }
  0xaa   : > { %s319_s22 = sshll.u32 %s312_s18, 4  ;;  %p2247_p10 = pnand %p1563_p5, %p2210_p11  ;;  %s2251_s22 = int_to_ptr.vmem [resolvable:$true] %s319_s22 }
  0xab   : > { %s309_s15 = scalar_lea.sflag [#allocation4], %s308_s21  ;;  %s1825_s17 = scalar_lea.hbm %s2243_s11, 128 }
  0xac   : > { %p1826_p8 = scmp.ne.s32.totalorder %s2243_s11, %s1825_s17  ;;  %p1827_p1 = pneg %p2247_p10 }
  0xad   : > { %s1830_s16 = scalar_lea.hbm %s2451_s0, 256  ;;  %p1831_p11 = scmp.lt.u32.totalorder %s2243_s11, %s2451_s0 }
  0xae   : > { %p1828_p3 = pnand %p1827_p1, %p1826_p8  ;;  %p1832_p6 = scmp.lt.u32.totalorder %s1830_s16, %s1825_s17 }
  0xaf   : > { %p1834_p0 = scmp.lt.u32.totalorder %s1825_s17, %s2243_s11 }
  0xb0   : > { %p1829_p12 = pneg %p1828_p3  ;;  %p1833_p13 = por %p1832_p6, %p1831_p11 }
  0xb2   : > { %p1835_p7 = por %p1834_p0, %p1833_p13 }
  0xb4   : > { %p1836_p5 = pnand %p1835_p7, %p1829_p12 }
  0xb6   : > { %1839 = shalt.err (!%p1836_p5)
}
  0xb7   : > { %s1840_s21 = scalar_lea.vmem %s2251_s22, 128  ;;  %s1959_s18 = smov [#allocation3]  }
  0xb8   : > { %p1841_p8 = scmp.ne.s32.totalorder %s2251_s22, %s1840_s21  ;;  %s1845_s23 = sshll.u32 %s1959_s18, 4  ;;  %s1846_s23 = int_to_ptr.vmem [resolvable:$false] %s1845_s23 }
  0xb9   : > { %s1847_s10 = scalar_lea.vmem %s1846_s23, 256  ;;  %p1848_p4 = scmp.lt.s32.totalorder %s2251_s22, %s1846_s23 }
  0xba   : > { %p1843_p3 = pnand %p1841_p8, %p1827_p1  ;;  %p1849_p11 = scmp.lt.s32.totalorder %s1847_s10, %s1840_s21 }
  0xbc   : > { %p1844_p9 = pneg %p1843_p3  ;;  %p1850_p6 = por %p1849_p11, %p1848_p4 }
  0xbe   : > { %p1851_p13 = pnand %p1850_p6, %p1844_p9 }
  0xc0   : > { %1854 = shalt.err (!%p1851_p13)
}
  0xc1   : > { %1552 = dma.hbm_to_vmem [thread:$0]  (!%p2247_p10), %s2243_s11, 128, %s2251_s22, %s309_s15  }
  0xc2   : > { %p2479_p12 = scmp.ne.s32.totalorder %s2468_s9, 0 }
  0xc3   : > { %s2281_s17 = sand.u32 (!%p2479_p12), 1, %s1933_s25  }
  0xc4   : > { %328 = sbr.rel (%p2479_p12) target bundleno = 2364 (0x93c), region = 48  ;;  %s1350_s16 = sshll.u32 (!%p2479_p12), %s2281_s17, 3 }
  0xc5   : > { %s331_s20 = scalar_lea.sflag (!%p2479_p12), [#allocation4], %s2281_s17  ;;  %s334_s13 = scalar_lea.vmem (!%p2479_p12), [#allocation3], %s1350_s16 }
  0xcb   : > { %1908 = dma.done.wait (%p2222_p2), %s331_s20, 128  }
  0xcc   : > { %1910 = vsyncadd (%p2222_p2), %s331_s20, 4294967168  ;;  %p2480_p4 = scmp.ne.s32.totalorder %s2467_s8, 0 }
  0xce   : > { %1912 = dma.done.wait (%p2480_p4), [#allocation7], 272  }
  0xcf   : > { %1914 = vsyncadd (%p2480_p4), [#allocation7], 4294967024 }
  0xd0   : > { %1916 = dma.done.wait (%p2480_p4), [#allocation10], 272  }
  0xd1   : > { %1918 = vsyncadd (%p2480_p4), [#allocation10], 4294967024 }
  0xd2   : > { %1920 = dma.done.wait (%p2480_p4), [#allocation13], 272  }
  0xd3   : > { %1922 = vsyncadd (%p2480_p4), [#allocation13], 4294967024  ;;  %v1960_v0 = vmov 0.0   ;;  %vm1961_vm0 = vmmov 0   ;;  %v1636_v1 = vld [vmem:[#allocation9] sm:$0xff]   ;;  %v1637_v2 = vld [vmem:[#allocation9 + $0x8] sm:$0xff]  }
  0xd4   : > { %1414 = vmatprep.subr.bf16.mxu0 %v1960_v0  ;;  %1418 = vmatprep.mubr.msk.bf16.mxu0 %vm1961_vm0, %v1960_v0  ;;  %v394_v3 = vld [vmem:[%s334_s13] sm:$0xff]  ;;  %v1638_v4 = vld [vmem:[#allocation6] sm:$0xff]   ;;  %v1639_v6 = vld [vmem:[#allocation6 + $0x8] sm:$0xff]   ;;  %vm419_vm1 = vcmask 261120   ;;  %vm464_vm2 = vcmask 519168   ;;  %vm539_vm3 = vcmask 64512  }
  0xd5   : > { %1422 = vmatprep.subr.bf16.mxu1 %v1960_v0  ;;  %1426 = vmatprep.mubr.msk.bf16.mxu1 %vm1961_vm0, %v1960_v0  ;;  %v395_v5 = vpack.c.bf16 %v394_v3, %v394_v3  ;;  %v1358_v7 = vld [vmem:[#allocation11] ss:$0 sm:$0xff]  ;;  %v1362_v18 = vld [vmem:[#allocation8] ss:$0 sm:$0xff]  ;;  %s1962_s8 = smov 120   ;;  %s1963_s9 = smov 96  }
  0xd6   : > { %1415 = vmatpush3.bf16.msra.mxu0 %v1636_v1  ;;  %1423 = vmatpush3.bf16.msra.mxu1 %v1638_v4  ;;  %vm604_vm4 = vcmask 1043456   ;;  %s1964_s7 = smov 88   ;;  %s1965_s11 = smov 112   ;;  %v651_v50 = vld [vmem:[#allocation12] sm:$0xf] }
  0xd7   : > { %1416 = vmatprep.subr.bf16.mxu0 %v1960_v0  ;;  %1424 = vmatprep.subr.bf16.mxu1 %v1960_v0  ;;  %s1966_s22 = smov 104   ;;  %v815_v54 = vsel %vm604_vm4, %v651_v50, 0  ;;  %v764_v55 = vld [vmem:[#allocation12 + $0x4] sm:$0xf]  ;;  %s1967_s12 = smov 80  }
  0xd8   : > { %v769_v56 = vsel %vm604_vm4, %v764_v55, 0  ;;  %s1968_s15 = smov 72   ;;  %s1381_s21 = sshll.u32 %s1941_s27, 7 }
  0xd9   : > { %s388_s18 = scalar_lea.vmem [#allocation15], %s1350_s16  ;;  %s2481_s13 = sld [smem:[#allocation22_spill]] }
  0xda   : > { %1417 = vmatpush3.bf16.msra.mxu0 %v1637_v2  ;;  %1425 = vmatpush3.bf16.msra.mxu1 %v1639_v6  ;;  %s1199_s23 = sshll.u32 %s388_s18, 4  ;;  %s1185_s27 = scalar_lea.sflag [#allocation5], %s2281_s17  ;;  %s2403_s23 = int_to_ptr.vmem [resolvable:$true] %s1199_s23 }
  0xdb   : > { %1430 = vmatprep.subr.bf16.mxu0 %v1960_v0  ;;  %1436 = vmatprep.subr.bf16.mxu1 %v1960_v0  ;;  %s1855_s16 = scalar_lea.vmem %s2403_s23, 128  ;;  %p2482_p9 = scmp.ne.s32.totalorder %s2476_s1, 0 }
  0xdc   : > { %p1856_p2 = scmp.ne.s32.totalorder %s2403_s23, %s1855_s16 }
  0xdd   : > { %1419 = vmatmul.mubr.msk.bf16.vlgmr.msra.gmra.mrb[0].mxu0 %vm419_vm1, %v395_v5  ;;  %1427 = vmatmul.mubr.msk.bf16.vlgmr.msra.gmra.mrb[0].mxu1 %vm419_vm1, %v395_v5 }
  0xde   : > { %1432 = vmatprep.mubr.msk.bf16.mxu0 %vm1961_vm0, %v1960_v0  ;;  %1438 = vmatprep.mubr.msk.bf16.mxu1 %vm1961_vm0, %v1960_v0  ;;  %p1857_p10 = pnand %p1856_p2, %p2482_p9 }
  0xe0   : > { %p1858_p1 = pneg %p1857_p10 }
 0x1b0   : > { %v457_v8 = vpop.f32.mrb[0].mxu0  ;;  %v531_v14 = vpop.f32.mrb[0].mxu1 }
 0x1b1   : > { %v458_v9 = vadd.f32 %v1358_v7, %v457_v8  ;;  %v1420_v10 = vpop.f32.mrb[1].mxu0  ;;  %v1428_v15 = vpop.f32.mrb[1].mxu1  ;;  %v532_v19 = vadd.f32 %v1362_v18, %v531_v14 }
 0x1b2   : > { %v460_v11 = vpop.f32.mrb[2].mxu0  ;;  %v534_v16 = vpop.f32.mrb[2].mxu1 }
 0x1b3   : > { %v463_v12 = vpack.c.bf16 %v458_v9, %v458_v9  ;;  %v1421_v13 = vpop.f32.mrb[3].mxu0  ;;  %v1429_v17 = vpop.f32.mrb[3].mxu1  ;;  %v537_v23 = vpack.c.bf16 %v532_v19, %v532_v19 }
 0x1b5   : > { %465 = vst.msk [vmem:[#allocation2] sm:$0xf] %vm464_vm2, %v463_v12 }
 0x1bc   : > { %v538_v20 = vld [vmem:[#allocation2] sm:$0xf] }
 0x1bd   : > { %v544_v21 = vsel %vm539_vm3, %v538_v20, 0  ;;  %v2320_v22 = vcombine.low %v538_v20, %v538_v20 }
 0x1be   : > { %1431 = vmatpush3.bf16.xpose.msra.mxu0 %v544_v21 }
 0x1bf   : > { %655 = vrot.lane.b32.xlu0 %v2320_v22, %s1962_s8  ;;  %1442 = vmatprep.subr.bf16.mxu0 %v1960_v0 }
 0x1c3   : > { %653 = vrot.lane.b32.xlu0 %v537_v23, %s1962_s8  ;;  %s2401_s8 = scalar_lea.hbm %s2481_s13, %s1381_s21 }
 0x1c5   : > { %1433 = vmatmul.mubr.msk.bf16.vlgmr.msra.gmra.mrb[4].mxu0 %vm539_vm3, %v537_v23 }
 0x1c6   : > { %1444 = vmatprep.mubr.msk.bf16.mxu0 %vm1961_vm0, %v1960_v0 }
 0x1c7   : > { %599 = vrot.lane.b32.xlu0 %v2320_v22, %s1963_s9  ;;  %s1969_s9 = smov [#allocation15]  }
 0x231   : > { %v656_v24 = vpop.permute.xlu0 %655 }
 0x232   : > { %v661_v25 = vsel %vm539_vm3, %v656_v24, 0 }
 0x233   : > { %1443 = vmatpush3.bf16.xpose.msra.mxu0 %v661_v25 }
 0x234   : > { %1454 = vmatprep.subr.bf16.mxu0 %v1960_v0 }
 0x235   : > { %v654_v26 = vpop.permute.xlu0 %653 }
 0x239   : > { %v600_v27 = vpop.permute.xlu0 %599 }
 0x23a   : > { %v606_v28 = vsel %vm604_vm4, %v600_v27, 0  ;;  %1445 = vmatmul.mubr.msk.bf16.vlgmr.msra.gmra.mrb[8].mxu0 %vm539_vm3, %v654_v26 }
 0x23b   : > { %1437 = vmatpush3.bf16.msra.mxu1 %v606_v28  ;;  %1456 = vmatprep.mubr.msk.bf16.mxu0 %vm1961_vm0, %v1960_v0 }
 0x23c   : > { %1448 = vmatprep.subr.bf16.mxu1 %v1960_v0  ;;  %1455 = vmatpush3.bf16.msra.mxu0 %v769_v56 }
 0x23d   : > { %1466 = vmatprep.subr.bf16.mxu0 %v1960_v0 }
 0x298   : > { %v580_v29 = vpop.f32.mrb[4].mxu0 }
 0x299   : > { %v1434_v30 = vpop.f32.mrb[5].mxu0  ;;  %v586_v31 = vsel %vm539_vm3, %v580_v29, -inf }
 0x29a   : > { %587 = vmax.xlane.f32.xlu1 %v586_v31  ;;  %v583_v32 = vpop.f32.mrb[6].mxu0 }
 0x29b   : > { %v1435_v33 = vpop.f32.mrb[7].mxu0 }
 0x30d   : > { %v697_v34 = vpop.f32.mrb[8].mxu0 }
 0x30e   : > { %v1446_v35 = vpop.f32.mrb[9].mxu0  ;;  %v703_v36 = vsel %vm539_vm3, %v697_v34, -inf }
 0x30f   : > { %704 = vmax.xlane.f32.xlu1 %v703_v36  ;;  %v700_v37 = vpop.f32.mrb[10].mxu0 }
 0x310   : > { %v1447_v38 = vpop.f32.mrb[11].mxu0 }
 0x320   : > { %713 = vrot.lane.b32.xlu1 %v2320_v22, %s1964_s7  ;;  %s1859_s7 = sshll.u32 %s1969_s9, 4  ;;  %s1860_s7 = int_to_ptr.vmem [resolvable:$false] %s1859_s7 }
 0x321   : > { %p1862_p0 = scmp.lt.s32.totalorder %s2403_s23, %s1860_s7 }
 0x324   : > { %859 = vrot.lane.b32.xlu1 %v2320_v22, %s1965_s11 }
 0x327   : > { %v588_v39 = vpop.xlane.xlu1 %587 }
 0x328   : > { %v589_v40 = vsub.f32 %v580_v29, %v588_v39  ;;  %857 = vrot.lane.b32.xlu1 %v537_v23, %s1965_s11  ;;  %v968_v39 = vld [vmem:[#allocation12 + $0x8] sm:$0xf]  ;;  %s1861_s11 = scalar_lea.vmem %s1860_s7, 256 }
 0x329   : > { %p1863_p7 = scmp.lt.s32.totalorder %s1861_s11, %s1855_s16 }
 0x32a   : > { %v590_v41 = vmul.f32 1.442695, %v589_v40  ;;  %v973_v40 = vsel %vm604_vm4, %v968_v39, 0 }
 0x32b   : > { %p1864_p5 = por %p1863_p7, %p1862_p0 }
 0x32c   : > { %1641 = vpow2.f32 %v590_v41 }
 0x32d   : > { %p1865_p8 = pnand %p1864_p5, %p1858_p1 }
 0x336   : > { %v1642_v42 = vpop.eup %1641 }
 0x337   : > { %v595_v43 = vpack.c.bf16 %v1642_v42, %v1642_v42  ;;  %v592_v44 = vsel %vm539_vm3, %v1642_v42, 0.0 }
 0x339   : > { %1439 = vmatmul.mubr.msk.bf16.vlgmr.msra.gmra.mrb[4].mxu1 %vm539_vm3, %v595_v43 }
 0x33a   : > { %1450 = vmatprep.mubr.msk.bf16.mxu1 %vm1961_vm0, %v1960_v0 }
 0x34c   : > { %593 = vadd.xlane.f32.xlu1 %v592_v44 }
 0x35d   : > { %1016 = vrot.lane.b32.xlu1 %v537_v23, %s1966_s22 }
 0x39c   : > { %v705_v45 = vpop.xlane.xlu1 %704 }
 0x39d   : > { %v706_v46 = vsub.f32 %v697_v34, %v705_v45 }
 0x39f   : > { %v707_v47 = vmul.f32 1.442695, %v706_v46 }
 0x3a0   : > { %v714_v48 = vpop.permute.xlu1 %713 }
 0x3a1   : > { %1643 = vpow2.f32 %v707_v47  ;;  %v719_v49 = vsel %vm604_vm4, %v714_v48, 0 }
 0x3a2   : > { %1449 = vmatpush3.bf16.msra.mxu1 %v719_v49 }
 0x3a3   : > { %1460 = vmatprep.subr.bf16.mxu1 %v1960_v0 }
 0x3a4   : > { %v860_v57 = vpop.permute.xlu1 %859 }
 0x3a5   : > { %v865_v14 = vsel %vm539_vm3, %v860_v57, 0 }
 0x3a8   : > { %v858_v58 = vpop.permute.xlu1 %857 }
 0x3ab   : > { %v1644_v51 = vpop.eup %1643 }
 0x3ac   : > { %v709_v52 = vsel %vm539_vm3, %v1644_v51, 0.0  ;;  %v712_v53 = vpack.c.bf16 %v1644_v51, %v1644_v51 }
 0x3ad   : > { %710 = vadd.xlane.f32.xlu0 %v709_v52 }
 0x3ae   : > { %1451 = vmatmul.mubr.msk.bf16.vlgmr.msra.gmra.mrb[8].mxu1 %vm539_vm3, %v712_v53 }
 0x3af   : > { %1461 = vmatpush3.bf16.msra.mxu1 %v815_v54  ;;  %1462 = vmatprep.mubr.msk.bf16.mxu1 %vm1961_vm0, %v1960_v0 }
 0x3b0   : > { %1472 = vmatprep.subr.bf16.mxu1 %v1960_v0 }
 0x3c3   : > { %917 = vrot.lane.b32.xlu0 %v2320_v22, %s1967_s12 }
 0x3d9   : > { %v594_v59 = vpop.xlane.xlu1 %593 }
 0x3da   : > { %1645 = vrcp.f32 %v594_v59 }
 0x3dd   : > { %v1017_v38 = vpop.permute.xlu1 %1016 }
 0x3e4   : > { %v1646_v60 = vpop.eup %1645 }
 0x40c   : > { %v642_v61 = vpop.f32.mrb[4].mxu1 }
 0x40d   : > { %v649_v62 = vmul.f32 %v1646_v60, %v642_v61  ;;  %v1440_v63 = vpop.f32.mrb[5].mxu1  ;;  %v1127_v61 = vld [vmem:[#allocation12 + $0xc] sm:$0xf] }
 0x40e   : > { %v645_v1 = vpop.f32.mrb[6].mxu1 }
 0x40f   : > { %v650_v2 = vpack.c.bf16 %v649_v62, %v649_v62  ;;  %v1441_v3 = vpop.f32.mrb[7].mxu1 }
 0x411   : > { %1463 = vmatmul.mubr.msk.bf16.vlgmr.msra.gmra.mrb[12].mxu1 %vm539_vm3, %v650_v2 }
 0x412   : > { %1474 = vmatprep.mubr.msk.bf16.mxu1 %vm1961_vm0, %v1960_v0 }
 0x43a   : > { %v711_v4 = vpop.xlane.xlu0 %710 }
 0x43b   : > { %1647 = vrcp.f32 %v711_v4 }
 0x43e   : > { %v918_v5 = vpop.permute.xlu0 %917 }
 0x43f   : > { %v923_v6 = vsel %vm604_vm4, %v918_v5, 0 }
 0x440   : > { %1473 = vmatpush3.bf16.msra.mxu1 %v923_v6 }
 0x441   : > { %1484 = vmatprep.subr.bf16.mxu1 %v1960_v0 }
 0x445   : > { %v1648_v7 = vpop.eup %1647 }
 0x481   : > { %v755_v8 = vpop.f32.mrb[8].mxu1 }
 0x482   : > { %v762_v9 = vmul.f32 %v1648_v7, %v755_v8  ;;  %v1452_v10 = vpop.f32.mrb[9].mxu1 }
 0x483   : > { %v758_v11 = vpop.f32.mrb[10].mxu1 }
 0x484   : > { %v763_v12 = vpack.c.bf16 %v762_v9, %v762_v9  ;;  %v1453_v13 = vpop.f32.mrb[11].mxu1 }
 0x485   : > { %v1379_v13 = vld [vmem:[#allocation14] ss:$0 sm:$0xff] }
 0x486   : > { %1457 = vmatmul.mubr.msk.bf16.vlgmr.msra.gmra.mrb[12].mxu0 %vm539_vm3, %v763_v12 }
 0x487   : > { %1467 = vmatpush3.bf16.xpose.msra.mxu0 %v865_v14  ;;  %1468 = vmatprep.mubr.msk.bf16.mxu0 %vm1961_vm0, %v1960_v0 }
 0x488   : > { %1478 = vmatprep.subr.bf16.mxu0 %v1960_v0 }
 0x48e   : > { %1469 = vmatmul.mubr.msk.bf16.vlgmr.msra.gmra.mrb[16].mxu0 %vm539_vm3, %v858_v58 }
 0x48f   : > { %1480 = vmatprep.mubr.msk.bf16.mxu0 %vm1961_vm0, %v1960_v0  ;;  %1479 = vmatpush3.bf16.msra.mxu0 %v973_v40 }
 0x490   : > { %1490 = vmatprep.subr.bf16.mxu0 %v1960_v0 }
 0x4e4   : > { %v851_v15 = vpop.f32.mrb[12].mxu1 }
 0x4e5   : > { %v1464_v16 = vpop.f32.mrb[13].mxu1 }
 0x4e6   : > { %v854_v17 = vpop.f32.mrb[14].mxu1 }
 0x4e7   : > { %v1465_v18 = vpop.f32.mrb[15].mxu1 }
 0x559   : > { %v805_v19 = vpop.f32.mrb[12].mxu0 }
 0x55a   : > { %v2368_v20 = vadd.f32 %v851_v15, %v805_v19  ;;  %v1458_v21 = vpop.f32.mrb[13].mxu0 }
 0x55b   : > { %v808_v23 = vpop.f32.mrb[14].mxu0 }
 0x55c   : > { %v1459_v24 = vpop.f32.mrb[15].mxu0 }
 0x561   : > { %v901_v25 = vpop.f32.mrb[16].mxu0 }
 0x562   : > { %v1470_v26 = vpop.f32.mrb[17].mxu0  ;;  %v907_v27 = vsel %vm539_vm3, %v901_v25, -inf }
 0x563   : > { %908 = vmax.xlane.f32.xlu0 %v907_v27  ;;  %v904_v28 = vpop.f32.mrb[18].mxu0 }
 0x564   : > { %v1471_v29 = vpop.f32.mrb[19].mxu0 }
 0x579   : > { %1018 = vrot.lane.b32.xlu0 %v2320_v22, %s1966_s22 }
 0x5f0   : > { %v909_v30 = vpop.xlane.xlu0 %908 }
 0x5f1   : > { %v910_v31 = vsub.f32 %v901_v25, %v909_v30 }
 0x5f3   : > { %v911_v32 = vmul.f32 1.442695, %v910_v31 }
 0x5f4   : > { %v1019_v34 = vpop.permute.xlu0 %1018 }
 0x5f5   : > { %1649 = vpow2.f32 %v911_v32  ;;  %v1024_v37 = vsel %vm539_vm3, %v1019_v34, 0 }
 0x5ff   : > { %v1650_v33 = vpop.eup %1649 }
 0x600   : > { %v913_v35 = vsel %vm539_vm3, %v1650_v33, 0.0  ;;  %v916_v36 = vpack.c.bf16 %v1650_v33, %v1650_v33 }
 0x601   : > { %914 = vadd.xlane.f32.xlu0 %v913_v35 }
 0x602   : > { %1475 = vmatmul.mubr.msk.bf16.vlgmr.msra.gmra.mrb[16].mxu1 %vm539_vm3, %v916_v36 }
 0x603   : > { %1485 = vmatpush3.bf16.xpose.msra.mxu1 %v1024_v37  ;;  %1486 = vmatprep.mubr.msk.bf16.mxu1 %vm1961_vm0, %v1960_v0 }
 0x604   : > { %1496 = vmatprep.subr.bf16.mxu1 %v1960_v0 }
 0x60a   : > { %1487 = vmatmul.mubr.msk.bf16.vlgmr.msra.gmra.mrb[20].mxu1 %vm539_vm3, %v1017_v38 }
 0x60b   : > { %1498 = vmatprep.mubr.msk.bf16.mxu1 %vm1961_vm0, %v1960_v0 }
 0x617   : > { %1076 = vrot.lane.b32.xlu0 %v2320_v22, %s1968_s15 }
 0x68e   : > { %v915_v41 = vpop.xlane.xlu0 %914 }
 0x68f   : > { %1651 = vrcp.f32 %v915_v41 }
 0x692   : > { %v1077_v46 = vpop.permute.xlu0 %1076 }
 0x693   : > { %v1082_v50 = vsel %vm604_vm4, %v1077_v46, 0 }
 0x699   : > { %v1652_v42 = vpop.eup %1651 }
 0x6d5   : > { %v959_v43 = vpop.f32.mrb[16].mxu1 }
 0x6d6   : > { %v966_v44 = vmul.f32 %v1652_v42, %v959_v43  ;;  %v1476_v45 = vpop.f32.mrb[17].mxu1 }
 0x6d7   : > { %v962_v47 = vpop.f32.mrb[18].mxu1 }
 0x6d8   : > { %v967_v48 = vpack.c.bf16 %v966_v44, %v966_v44  ;;  %v1477_v49 = vpop.f32.mrb[19].mxu1 }
 0x6da   : > { %1481 = vmatmul.mubr.msk.bf16.vlgmr.msra.gmra.mrb[20].mxu0 %vm539_vm3, %v967_v48 }
 0x6db   : > { %1491 = vmatpush3.bf16.msra.mxu0 %v1082_v50  ;;  %1492 = vmatprep.mubr.msk.bf16.mxu0 %vm1961_vm0, %v1960_v0  ;;  %v1132_v0 = vsel %vm604_vm4, %v1127_v61, 0 }
 0x6dc   : > { %1497 = vmatpush3.bf16.msra.mxu1 %v1132_v0 }
 0x6dd   : > { %v1060_v22 = vpop.f32.mrb[20].mxu1 }
 0x6de   : > { %v1488_v51 = vpop.f32.mrb[21].mxu1  ;;  %v1066_v52 = vsel %vm539_vm3, %v1060_v22, -inf }
 0x6df   : > { %1067 = vmax.xlane.f32.xlu1 %v1066_v52  ;;  %v1063_v53 = vpop.f32.mrb[22].mxu1 }
 0x6e0   : > { %v1489_v54 = vpop.f32.mrb[23].mxu1 }
 0x76c   : > { %v1068_v55 = vpop.xlane.xlu1 %1067 }
 0x76d   : > { %v1069_v56 = vsub.f32 %v1060_v22, %v1068_v55 }
 0x76f   : > { %v1070_v57 = vmul.f32 1.442695, %v1069_v56 }
 0x771   : > { %1653 = vpow2.f32 %v1070_v57 }
 0x77b   : > { %v1654_v58 = vpop.eup %1653 }
 0x77c   : > { %v1072_v59 = vsel %vm539_vm3, %v1654_v58, 0.0  ;;  %v1075_v60 = vpack.c.bf16 %v1654_v58, %v1654_v58 }
 0x77d   : > { %1073 = vadd.xlane.f32.xlu1 %v1072_v59 }
 0x77e   : > { %1493 = vmatmul.mubr.msk.bf16.vlgmr.msra.gmra.mrb[24].mxu0 %vm539_vm3, %v1075_v60 }
 0x7ad   : > { %v1009_v62 = vpop.f32.mrb[20].mxu0 }
 0x7ae   : > { %v1015_v63 = vadd.f32 %v1009_v62, %v2368_v20  ;;  %v1482_v1 = vpop.f32.mrb[21].mxu0 }
 0x7af   : > { %v1012_v2 = vpop.f32.mrb[22].mxu0 }
 0x7b0   : > { %v1483_v3 = vpop.f32.mrb[23].mxu0 }
 0x80a   : > { %v1074_v4 = vpop.xlane.xlu1 %1073 }
 0x80b   : > { %1655 = vrcp.f32 %v1074_v4 }
 0x815   : > { %v1656_v5 = vpop.eup %1655 }
 0x851   : > { %v1118_v6 = vpop.f32.mrb[24].mxu0 }
 0x852   : > { %v1125_v7 = vmul.f32 %v1656_v5, %v1118_v6  ;;  %v1494_v8 = vpop.f32.mrb[25].mxu0 }
 0x853   : > { %v1121_v9 = vpop.f32.mrb[26].mxu0 }
 0x854   : > { %v1126_v10 = vpack.c.bf16 %v1125_v7, %v1125_v7  ;;  %v1495_v11 = vpop.f32.mrb[27].mxu0 }
 0x856   : > { %1499 = vmatmul.mubr.msk.bf16.vlgmr.msra.gmra.mrb[24].mxu1 %vm539_vm3, %v1126_v10 }
 0x929   : > { %v1168_v12 = vpop.f32.mrb[24].mxu1 }
 0x92a   : > { %v1174_v14 = vadd.f32 %v1168_v12, %v1015_v63  ;;  %v1500_v15 = vpop.f32.mrb[25].mxu1 }
 0x92b   : > { %v1171_v16 = vpop.f32.mrb[26].mxu1 }
 0x92c   : > { %v1182_v17 = vadd.f32 %v1379_v13, %v1174_v14  ;;  %v1501_v18 = vpop.f32.mrb[27].mxu1 }
 0x92e   : > { %1183 = vst.msk [vmem:[%s388_s18] sm:$0xff] %vm419_vm1, %v1182_v17 }
 0x92f   : > { %1868 = shalt.err (!%p1865_p8)
}
 0x930   : > { %s1869_s17 = scalar_lea.hbm %s2401_s8, 128  ;;  %s1873_s15 = scalar_lea.hbm %s2481_s13, 256 }
 0x931   : > { %p1870_p3 = scmp.ne.s32.totalorder %s2401_s8, %s1869_s17  ;;  %p1874_p13 = scmp.lt.u32.totalorder %s2401_s8, %s2481_s13 }
 0x932   : > { %p1875_p12 = scmp.lt.u32.totalorder %s1873_s15, %s1869_s17  ;;  %p1877_p2 = scmp.lt.u32.totalorder %s1869_s17, %s2401_s8 }
 0x933   : > { %p1871_p11 = pnand %p1870_p3, %p2482_p9 }
 0x934   : > { %p1876_p4 = por %p1875_p12, %p1874_p13 }
 0x935   : > { %p1872_p6 = pneg %p1871_p11 }
 0x936   : > { %p1878_p10 = por %p1877_p2, %p1876_p4 }
 0x938   : > { %p1879_p1 = pnand %p1878_p10, %p1872_p6 }
 0x93a   : > { %1882 = shalt.err (!%p1879_p1)
}
 0x93b   : > { %1528 = dma.vmem_to_hbm [thread:$0]  (%p2482_p9), %s2403_s23, 128, %s2401_s8, %s1185_s27  }
 0x93c PF: > { %s1211_s10 = sand.u32 1, %s1929_s24   ;;  %p2483_p0 = scmp.ne.s32.totalorder %s2477_s19, 0 }
 0x93d   : > { %p2484_p7 = scmp.ge.s32.totalorder %s1949_s29, 2  ;;  %s1212_s20 = scalar_lea.sflag [#allocation5], %s1211_s10 }
 0x93f   : > { %p1554_p5 = pnand %p2484_p7, %p2483_p0 }
 0x941   : > { %1924 = dma.done.wait (!%p1554_p5), %s1212_s20, 128  }
 0x942   : > { %1926 = vsyncadd (!%p1554_p5), %s1212_s20, 4294967168  ;;  %s26_s29 = sadd.s32 1, %s1949_s29   ;;  %s2485_s24 = smov %s1933_s25 }
 0x943   : > { %p23_p8 = scmp.ge.s32.totalorder %s26_s29, 4   ;;  %s2486_s25 = smov %s1937_s26 }
 0x944   : > { %s2487_s26 = smov %s2231_s30  ;;  %s2488_s27 = smov %s1945_s28 }
 0x945   : > { %s2489_s28 = smov %s2491_s14  ;;  %25 = sbr.rel (!%p23_p8) target bundleno = 12 (0xc), region = 122 }
 0x94c   :  { %1217 = vsyncpa [#allocation4], 1 }
 0x94d   :  { %1219 = vsyncpa [#allocation4 + $0x1], 1 }
 0x94e   :  { %1220 = vsyncpa [#allocation7], 1 }
 0x94f   :  { %1221 = vsyncpa [#allocation10], 1 }
 0x950   :  { %1222 = vsyncpa [#allocation13], 1 }
 0x951   :  { %1223 = vsyncpa [#allocation5], 1 }
 0x952   :  { %1225 = vsyncpa [#allocation5 + $0x1], 1 }

</bundles_post_ra>
